<compile_context>
chip_gen: v7x
topology: tpu7x:2x2x1
jax: 0.10.0
libtpu: 0.0.40
codegen_flags: <defaults>
</compile_context>

<pallas_src>
from typing import NamedTuple

import jax
import jax.numpy as jnp
from jax.experimental import pallas as pl
from jax.experimental.pallas import tpu as pltpu


def _round_up(x, m):
    return (x + m - 1) // m * m


def _pick_tile(dim, unit, max_tile):
    """Pick (tile, padded_dim) for an axis of extent `dim`.

    If the whole axis fits in one tile, use the full extent (a block dim equal
    to the array dim needs no (8,128) alignment) so no padding is required.
    Otherwise pick the multiple of `unit` <= max_tile that minimizes the
    padded extent, preferring the largest such tile.
    """
    if dim <= max_tile:
        return dim, dim
    best_tile, best_pad = None, None
    t = unit
    while t <= max_tile:
        p = _round_up(dim, t)
        if best_pad is None or p < best_pad or (p == best_pad and t > best_tile):
            best_tile, best_pad = t, p
        t += unit
    return best_tile, best_pad


class OutputLayerPlan(NamedTuple):
    """Static tiling metadata (plain Python ints / dtype; if you jit the
    forward, pass this as a static argument)."""
    d_model: int
    embedding_size: int
    eo: int        # embedding_size // 3
    eo_pad: int    # per-head padded column count (multiple of 128)
    tn: int        # N tile (divides eo_pad)
    k_pad: int     # padded d_model
    tk: int        # K tile (divides k_pad)
    compute_dtype: object


def prepare_output_layer_params(weight, bias, *, tn=1024, tk=1024,
                                compute_dtype=jnp.bfloat16):
    """One-time prep of OutputLayer params (hoist out of the per-step call).

    weight: (d_model, embedding_size)  -- transpose of torch Linear's layout
    bias:   (embedding_size,)
    Returns (w_prepped, b_prepped, plan).
    """
    d_model, E = weight.shape
    if E % 3 != 0:
        raise ValueError("embedding_size must be divisible by 3")
    assert bias.shape == (E,)
    Eo = E // 3

    cdt = jnp.dtype(weight.dtype) if compute_dtype is None else jnp.dtype(compute_dtype)
    tn_eff, eo_pad = _pick_tile(_round_up(Eo, 128), 128, tn)
    tk_eff, k_pad = _pick_tile(d_model, 128, tk)

    # Per-head zero padding of the columns: every N tile lies inside exactly
    # one of the h/v/o heads, so the post-kernel split is a contiguous slice.
    w3 = weight.reshape(d_model, 3, Eo)
    w3 = jnp.pad(w3, ((0, k_pad - d_model), (0, 0), (0, eo_pad - Eo)))
    w_prepped = w3.reshape(k_pad, 3 * eo_pad).astype(cdt)

    b3 = bias.astype(jnp.float32).reshape(3, Eo)
    b3 = jnp.pad(b3, ((0, 0), (0, eo_pad - Eo)))
    b_prepped = b3.reshape(1, 3 * eo_pad)

    plan = OutputLayerPlan(d_model=d_model, embedding_size=E, eo=Eo,
                           eo_pad=eo_pad, tn=tn_eff, k_pad=k_pad, tk=tk_eff,
                           compute_dtype=cdt)
    return w_prepped, b_prepped, plan


def _linear_bias_kernel_single_k(x_ref, w_ref, b_ref, o_ref):
    # Single K step: no accumulator scratch, no pl.when branches.
    acc = jnp.dot(x_ref[...].astype(w_ref.dtype), w_ref[...],
                  preferred_element_type=jnp.float32)
    o_ref[...] = (acc + b_ref[...]).astype(o_ref.dtype)


def _linear_bias_kernel_multi_k(x_ref, w_ref, b_ref, o_ref, acc_ref):
    k = pl.program_id(2)
    xw = jnp.dot(x_ref[...].astype(w_ref.dtype), w_ref[...],
                 preferred_element_type=jnp.float32)

    @pl.when(k == 0)
    def _():
        acc_ref[...] = xw            # direct write: no zero-init + add

    @pl.when(k > 0)
    def _():
        acc_ref[...] += xw

    @pl.when(k == pl.num_programs(2) - 1)
    def _():
        o_ref[...] = (acc_ref[...] + b_ref[...]).astype(o_ref.dtype)


def output_layer_forward(decoder_out, w_prepped, b_prepped, plan, *, tm=512):
    """Pallas equivalent of OutputLayer.forward.

    decoder_out: (B, S, d_model)
    w_prepped/b_prepped/plan: from prepare_output_layer_params (prep once).
    returns (h_logits, v_logits, o_logits), each (B, S, embedding_size // 3).
    """
    B, S, d_model = decoder_out.shape
    assert d_model == plan.d_model
    M = B * S
    out_dtype = decoder_out.dtype
    Eo, eo_pad, tn_eff = plan.eo, plan.eo_pad, plan.tn
    k_pad, tk_eff = plan.k_pad, plan.tk

    # Sublane granularity for the row tile: 8 for 4-byte, 16 for bf16 inputs.
    m_unit = max(8, 32 // jnp.dtype(out_dtype).itemsize)
    tm_eff, m_pad = _pick_tile(M, m_unit, max(tm, m_unit))

    x2d = decoder_out.reshape(M, d_model)          # free view; dtype unchanged
    if (m_pad, k_pad) != (M, d_model):
        x2d = jnp.pad(x2d, ((0, m_pad - M), (0, k_pad - d_model)))

    grid = (m_pad // tm_eff, (3 * eo_pad) // tn_eff, k_pad // tk_eff)
    multi_k = grid[2] > 1
    kernel = _linear_bias_kernel_multi_k if multi_k else _linear_bias_kernel_single_k
    scratch = [pltpu.VMEM((tm_eff, tn_eff), jnp.float32)] if multi_k else []

    y_pad = pl.pallas_call(
        kernel,
        out_shape=jax.ShapeDtypeStruct((m_pad, 3 * eo_pad), out_dtype),
        grid_spec=pltpu.PrefetchScalarGridSpec(
            num_scalar_prefetch=0,
            grid=grid,
            in_specs=[
                pl.BlockSpec((tm_eff, tk_eff), lambda i, j, k: (i, k)),
                pl.BlockSpec((tk_eff, tn_eff), lambda i, j, k: (k, j)),
                pl.BlockSpec((1, tn_eff), lambda i, j, k: (0, j)),
            ],
            out_specs=pl.BlockSpec((tm_eff, tn_eff), lambda i, j, k: (i, j)),
            scratch_shapes=scratch,
        ),
        compiler_params=pltpu.CompilerParams(
            dimension_semantics=("parallel", "parallel", "arbitrary")),
    )(x2d, w_prepped, b_prepped)

    # Heads live in separate padded column stripes -> contiguous slices only
    # (no intermediate full-logits copy).
    def head(h):
        return y_pad[:M, h * eo_pad: h * eo_pad + Eo].reshape(B, S, Eo)

    return head(0), head(1), head(2)


if __name__ == "__main__":
    key = jax.random.PRNGKey(0)

    def run_case(B, S, d_model, embedding_size, bias_fill, *, tm=512, tn=1024, tk=1024):
        kx, kw = jax.random.split(jax.random.fold_in(key, d_model))
        decoder_out = jax.random.normal(kx, (B, S, d_model), dtype=jnp.float32)

        # Init matching OutputLayer.init_weights: weight ~ U(-0.1, 0.1),
        # bias = 0.0 ('tanh') or 0.5 ('sigmoid').  Stored as (d_model, E).
        initrange = 0.1
        weight = jax.random.uniform(
            kw, (d_model, embedding_size), dtype=jnp.float32,
            minval=-initrange, maxval=initrange)
        bias = jnp.full((embedding_size,), bias_fill, dtype=jnp.float32)

        # Hoisted out of the hot path: bf16 cast + per-head pad, done once.
        w_p, b_p, plan = prepare_output_layer_params(weight, bias, tn=tn, tk=tk)

        h, v, o = output_layer_forward(decoder_out, w_p, b_p, plan, tm=tm)
        jax.block_until_ready((h, v, o))

        # Reference in plain JAX with the same bf16 operand rounding
        # (accumulation in f32, matching the kernel).
        Eo = embedding_size // 3
        x32 = decoder_out.reshape(B * S, d_model).astype(jnp.bfloat16).astype(jnp.float32)
        w32 = weight.astype(jnp.bfloat16).astype(jnp.float32)
        y_ref = (x32 @ w32 + bias).reshape(B, S, 3, Eo)
        refs = (y_ref[:, :, 0, :], y_ref[:, :, 1, :], y_ref[:, :, 2, :])
        for got, want in zip((h, v, o), refs):
            assert got.shape == (B, S, Eo)
            assert jnp.allclose(got, want, atol=1e-3, rtol=1e-3)

    # Small shapes consistent with the module.
    run_case(2, 8, 32, 27, 0.0)               # single-K-step kernel path
    run_case(2, 8, 256, 384, 0.5, tk=128)     # K-tiled accumulator path

    print("KERNEL_OK")
</pallas_src>

<mosaic_0001>
module attributes {stable_mosaic.version = 11 : i64} {
  func.func @_linear_bias_kernel_single_k(%arg0: i32, %arg1: i32, %arg2: i32, %arg3: memref<16x32xf32, #tpu.memory_space<vmem>>, %arg4: memref<32x128xbf16, #tpu.memory_space<vmem>>, %arg5: memref<1x128xf32, #tpu.memory_space<vmem>>, %arg6: memref<16x128xf32, #tpu.memory_space<vmem>>) attributes {dimension_semantics = [#tpu.dimension_semantics<parallel>, #tpu.dimension_semantics<parallel>, #tpu.dimension_semantics<arbitrary>], iteration_bounds = array<i64: 1, 3, 1>, scalar_prefetch = 0 : i64, scratch_operands = 0 : i64, tpu.core_type = #tpu.core_type<tc>, window_params = [{transform_indices = @transform_0, window_bounds = array<i64: 16, 32>}, {transform_indices = @transform_1, window_bounds = array<i64: 32, 128>}, {transform_indices = @transform_2, window_bounds = array<i64: 1, 128>}, {transform_indices = @transform_3, window_bounds = array<i64: 16, 128>}]} {
    %c0 = arith.constant 0 : index
    %c0_0 = arith.constant 0 : index
    %0 = vector.load %arg3[%c0, %c0_0] : memref<16x32xf32, #tpu.memory_space<vmem>>, vector<16x32xf32>
    %1 = arith.truncf %0 : vector<16x32xf32> to vector<16x32xbf16>
    %c0_1 = arith.constant 0 : index
    %c0_2 = arith.constant 0 : index
    %2 = vector.load %arg4[%c0_1, %c0_2] : memref<32x128xbf16, #tpu.memory_space<vmem>>, vector<32x128xbf16>
    %cst = arith.constant dense<0.000000e+00> : vector<16x128xf32>
    %3 = tpu.matmul %1, %2, %cst {dimension_numbers = #tpu.dot_dimension_numbers<[1], [0], [0], [1], [0, 0, 1, 1], [], []>} : vector<16x32xbf16>, vector<32x128xbf16>, vector<16x128xf32> -> vector<16x128xf32>
    %c0_3 = arith.constant 0 : index
    %c0_4 = arith.constant 0 : index
    %4 = vector.load %arg5[%c0_3, %c0_4] : memref<1x128xf32, #tpu.memory_space<vmem>>, vector<1x128xf32>
    %5 = vector.broadcast %4 : vector<1x128xf32> to vector<16x128xf32>
    %6 = arith.addf %3, %5 : vector<16x128xf32>
    %c0_5 = arith.constant 0 : index
    %c0_6 = arith.constant 0 : index
    %7 = vector.load %arg6[%c0_5, %c0_6] : memref<16x128xf32, #tpu.memory_space<vmem>>, vector<16x128xf32>
    tpu.vector_store %arg6[%c0_5, %c0_6], %6 {strides = array<i32>} : memref<16x128xf32, #tpu.memory_space<vmem>>, vector<16x128xf32>,
    return
  }
  func.func @transform_0(%arg0: i32, %arg1: i32, %arg2: i32) -> (i32, i32) {
    %c0_i32 = arith.constant 0 : i32
    return %arg0, %arg2 : i32, i32
  }
  func.func @transform_1(%arg0: i32, %arg1: i32, %arg2: i32) -> (i32, i32) {
    %c0_i32 = arith.constant 0 : i32
    return %arg2, %arg1 : i32, i32
  }
  func.func @transform_2(%arg0: i32, %arg1: i32, %arg2: i32) -> (i32, i32) {
    %c0_i32 = arith.constant 0 : i32
    %c0_i32_0 = arith.constant 0 : i32
    return %c0_i32, %arg1 : i32, i32
  }
  func.func @transform_3(%arg0: i32, %arg1: i32, %arg2: i32) -> (i32, i32) {
    %c0_i32 = arith.constant 0 : i32
    return %arg0, %arg1 : i32, i32
  }
}

</mosaic_0001>

<bundles_post_ra>
// kernel: tpu_custom_call.1
= control target key start
LH: loop header
LB: loop body
LE: loop exit
PB: predicated region body
PF: predicated region fallthrough
CT: control target
= control target key end

     0   :  { %8 = vsyncpa [#allocation3], 0  ;;  %s970_s0 = inlined_call_operand.hbm [shape: f32[16,32], index: 0, kind: input, shape index: {}]   ;;  %s971_s1 = inlined_call_operand.hbm [shape: bf16[32,384], index: 1, kind: input, shape index: {}]   ;;  %s972_s2 = inlined_call_operand.vmem [shape: f32[1,384], index: 2, kind: input, shape index: {}]   ;;  %s973_s3 = inlined_call_operand.hbm [shape: f32[16,384], index: 3, kind: output, shape index: {}]  }
   0x1   :  { %9 = vsyncpa [#allocation6], 0 }
   0x2   :  { %11 = vsyncpa [#allocation6 + $0x1], 0 }
   0x3   :  { %12 = vsyncpa [#allocation4], 0 }
   0x4   :  { %14 = vsyncpa [#allocation4 + $0x1], 0  ;;  %s754_s12 = smov 0   ;;  %s756_s13 = smov 0  }
   0x5   :  { %s758_s14 = smov 0   ;;  %s760_s15 = smov 0  }
   0x6   :  { %s762_s16 = smov 0   ;;  %s764_s17 = smov 0  }
   0x7 LB: > { %s460_s18 = sadd.s32 4294967295, %s719_s17   ;;  %s461_s19 = sadd.s32 4294967294, %s719_s17   ;;  %s719_s17 = sphi %s764_s17, %s20_s17   ;;  %s715_s16 = sphi %s762_s16, %s998_s16   ;;  %s711_s15 = sphi %s760_s15, %s997_s15   ;;  %s707_s14 = sphi %s758_s14, %s996_s14   ;;  %s703_s13 = sphi %s756_s13, %s995_s13   ;;  %s699_s12 = sphi %s754_s12, %s994_s12  }
   0x8   : > { %p83_p0 = scmp.ne.s32.totalorder %s707_s14, %s703_s13  ;;  %p84_p1 = scmp.eq.s32.totalorder %s719_s17, 0 }
   0x9   : > { %p89_p2 = scmp.ne.s32.totalorder %s703_s13, %s699_s12  ;;  %p791_p3 = scmp.eq.s32.totalorder %s460_s18, 0 }
   0xa   : > { %p795_p4 = por %p84_p1, %p83_p0  ;;  %p141_p5 = scmp.eq.s32.totalorder %s460_s18, 2 }
   0xb   : > { %s980_s20 = scalar_select %p791_p3, 1, 0 }
   0xc   : > { %p801_p6 = por %p791_p3, %p89_p2  ;;  %p147_p7 = scmp.eq.s32.totalorder %s461_s19, 2 }
   0xd   : > { %p805_p8 = por %p141_p5, %p83_p0  ;;  %p462_p9 = scmp.ge.s32.totalorder %s719_s17, 1 }
   0xe   : > { %s982_s22 = scalar_select %p801_p6, 1, 0 }
   0xf   : > { %s983_s23 = scalar_select %p805_p8, 1, 0 }
  0x10   : > { %p810_p10 = por %p147_p7, %p89_p2  ;;  %p154_p11 = scmp.lt.s32.totalorder %s719_s17, 4 }
  0x11   : > { %s721_s26 = smov [#allocation2]   ;;  %p511_p0 = scmp.lt.s32.totalorder %s719_s17, 3 }
  0x12   : > { %s984_s24 = scalar_select %p810_p10, 1, 0 }
  0x13   : > { %p815_p12 = pnand %p462_p9, %p154_p11  ;;  %s170_s27 = sshll.u32 %s721_s26, 4  ;;  %s171_s27 = int_to_ptr.vmem [resolvable:$true] %s170_s27 }
  0x14   : > { %p830_p2 = pnand %p511_p0, %p795_p4  ;;  %s35_s30 = sadd.s32 1, %s715_s16 }
  0x15   : > { %s985_s25 = scalar_select %p815_p12, 1, 0 }
  0x16   : > { %p498_p13 = pneg %p815_p12  ;;  %s575_s6 = scalar_lea.hbm %s970_s0, 256 }
  0x17   : > { %s987_s29 = scalar_select %p830_p2, 1, 0 }
  0x18   : > { %p824_p1 = pnand %p498_p13, %p791_p3  ;;  %p576_p5 = scmp.ne.s32.totalorder %s970_s0, %s575_s6 }
  0x19   : > { %p582_p4 = scmp.lt.u32.totalorder %s575_s6, %s970_s0 }
  0x1a   : > { %p577_p7 = pneg %p824_p1 }
  0x1c   : > { %p578_p9 = pnand %p577_p7, %p576_p5 }
  0x1e   : > { %p579_p11 = pneg %p578_p9 }
  0x20   : > { %p584_p13 = pnand %p582_p4, %p579_p11 }
  0x22   : > { %587 = shalt.err (!%p584_p13)
}
  0x23   : > { %s588_s11 = scalar_lea.vmem %s171_s27, 256  ;;  %p596_p6 = scmp.lt.s32.totalorder %s171_s27, %s171_s27 }
  0x24   : > { %p589_p0 = scmp.ne.s32.totalorder %s171_s27, %s588_s11  ;;  %p597_p3 = scmp.lt.s32.totalorder %s588_s11, %s588_s11 }
  0x26   : > { %p591_p10 = pnand %p589_p0, %p577_p7  ;;  %p598_p12 = por %p597_p3, %p596_p6 }
  0x28   : > { %p592_p8 = pneg %p591_p10 }
  0x2a   : > { %p599_p2 = pnand %p598_p12, %p592_p8 }
  0x2c   : > { %602 = shalt.err (!%p599_p2)
}
  0x2d   : > { %s722_s18 = smov 128   ;;  %s723_s19 = smov 8  }
  0x2e   : > { %501 = dma.hbm_to_vmem [thread:$0]  (!%p824_p1), %s970_s0, 256, %s171_s27, [#allocation3], %s722_s18, %s722_s18, %s723_s19  }
  0x2f   : > { %p37_p5 = scmp.ge.s32.totalorder %s35_s30, 3  ;;  %s76_s4 = sadd.s32 1, %s707_s14 }
  0x30   : > { %s184_s5 = sand.u32 1, %s707_s14   ;;  %s466_s8 = sshll.u32 %s715_s16, 6 }
  0x31   : > { %s1000_s30 = smov (%p37_p5, %s35_s30), 0  ;;  %s465_s6 = sshll.u32 %s184_s5, 4 }
  0x32   : > { %s72_s7 = ssub.s32 %s715_s16, %s1000_s30  ;;  %s861_s28 = scalar_lea.hbm %s971_s1, %s466_s8 }
  0x33   : > { %p74_p3 = scmp.eq.s32.totalorder %s72_s7, 0  ;;  %s188_s27 = scalar_lea.vmem [#allocation5], %s465_s6 }
  0x34   : > { %s197_s11 = sshll.u32 %s188_s27, 4  ;;  %s868_s19 = scalar_lea.sflag [#allocation6], %s184_s5  ;;  %s866_s11 = int_to_ptr.vmem [resolvable:$true] %s197_s11 }
  0x35   : > { %s864_s18 = scalar_select %p74_p3, %s707_s14, %s76_s4  }
  0x36   : > { %s603_s21 = scalar_lea.hbm %s861_s28, 256  ;;  %p988_p8 = scmp.ne.s32.totalorder %s987_s29, 0 }
  0x37   : > { %p604_p6 = scmp.ne.s32.totalorder %s861_s28, %s603_s21  ;;  %s608_s8 = scalar_lea.hbm %s971_s1, 768 }
  0x38   : > { %p605_p10 = pneg %p988_p8  ;;  %p609_p2 = scmp.lt.u32.totalorder %s861_s28, %s971_s1 }
  0x39   : > { %p610_p7 = scmp.lt.u32.totalorder %s608_s8, %s603_s21  ;;  %p612_p11 = scmp.lt.u32.totalorder %s603_s21, %s861_s28 }
  0x3a   : > { %p606_p12 = pnand %p605_p10, %p604_p6 }
  0x3b   : > { %p611_p9 = por %p610_p7, %p609_p2 }
  0x3c   : > { %p607_p1 = pneg %p606_p12 }
  0x3d   : > { %p613_p4 = por %p612_p11, %p611_p9 }
  0x3f   : > { %p614_p13 = pnand %p613_p4, %p607_p1 }
  0x41   : > { %617 = shalt.err (!%p614_p13)
}
  0x42   : > { %s618_s4 = scalar_lea.vmem %s866_s11, 256  ;;  %s724_s5 = smov [#allocation5]  }
  0x43   : > { %p619_p0 = scmp.ne.s32.totalorder %s866_s11, %s618_s4  ;;  %s623_s10 = sshll.u32 %s724_s5, 4  ;;  %s624_s10 = int_to_ptr.vmem [resolvable:$false] %s623_s10 }
  0x44   : > { %s625_s27 = scalar_lea.vmem %s624_s10, 512  ;;  %p626_p6 = scmp.lt.s32.totalorder %s866_s11, %s624_s10 }
  0x45   : > { %p621_p5 = pnand %p619_p0, %p605_p10  ;;  %p627_p12 = scmp.lt.s32.totalorder %s625_s27, %s618_s4 }
  0x47   : > { %p622_p3 = pneg %p621_p5  ;;  %p628_p2 = por %p627_p12, %p626_p6 }
  0x49   : > { %p629_p7 = pnand %p628_p2, %p622_p3 }
  0x4b   : > { %632 = shalt.err (!%p629_p7)
}
  0x4c   : > { %s725_s21 = smov 192   ;;  %s726_s26 = smov 64  }
  0x4d   : > { %s727_s7 = smov 4   ;;  %p989_p10 = scmp.ne.s32.totalorder %s985_s25, 0 }
  0x4e   : > { %505 = dma.hbm_to_vmem [thread:$0]  (!%p988_p8), %s861_s28, 256, %s866_s11, %s868_s19, %s725_s21, %s726_s26, %s727_s7  }
  0x4f   : > { %215 = sbr.rel (%p989_p10) target bundleno = 332 (0x14c), region = 32  ;;  %p990_p1 = scmp.ne.s32.totalorder (!%p989_p10), %s980_s20, 0 }
  0x56   : > { %686 = dma.done.wait (%p990_p1), [#allocation3], 256  }
  0x57   : > { %688 = vsyncadd (%p990_p1), [#allocation3], 4294967040  ;;  %s903_s8 = sand.u32 1, %s703_s13   ;;  %p991_p9 = scmp.ne.s32.totalorder %s982_s22, 0 }
  0x58   : > { %s469_s6 = sshll.u32 %s903_s8, 4  ;;  %s222_s9 = scalar_lea.sflag [#allocation6], %s903_s8 }
  0x59   : > { %s225_s4 = scalar_lea.vmem [#allocation5], %s469_s6 }
  0x5a   : > { %690 = dma.done.wait (%p991_p9), %s222_s9, 256  }
  0x5b   : > { %692 = vsyncadd (%p991_p9), %s222_s9, 4294967040  ;;  %v728_v0 = vmov 0.0   ;;  %vm729_vm0 = vmmov 0   ;;  %v573_v1 = vld [vmem:[%s225_s4] sm:$0xff]   ;;  %v574_v2 = vld [vmem:[%s225_s4 + $0x8] sm:$0xff]   ;;  %vm284_vm1 = vcmask 261120  }
  0x5c   : > { %482 = vmatprep.subr.bf16.mxu0 %v728_v0  ;;  %486 = vmatprep.mubr.msk.bf16.mxu0 %vm729_vm0, %v728_v0  ;;  %v258_v3 = vld [vmem:[#allocation2] sm:$0xff]  ;;  %v259_v4 = vld [vmem:[#allocation2 + $0x8] sm:$0xff]  ;;  %p253_p8 = scmp.lt.s32.totalorder %s711_s15, 2  ;;  %s250_s28 = scalar_lea.vmem [#allocation7], %s469_s6 }
  0x5d   : > { %483 = vmatpush3.bf16.msra.mxu0 %v573_v1  ;;  %v260_v5 = vpack.c.bf16 %v259_v4, %v258_v3  ;;  %s347_s11 = sshll.u32 %s250_s28, 4  ;;  %s476_s19 = sshll.u32 %s711_s15, 7  ;;  %s917_s11 = int_to_ptr.vmem [resolvable:$true] %s347_s11 }
  0x5e   : > { %484 = vmatprep.subr.bf16.mxu0 %v728_v0  ;;  %s254_s20 = scalar_select %p253_p8, %s711_s15, 2 }
  0x5f   : > { %s922_s27 = scalar_lea.hbm %s973_s3, %s476_s19  ;;  %s332_s21 = scalar_lea.sflag [#allocation4], %s903_s8 }
  0x60   : > { %s255_s29 = scalar_lea.vmem %s972_s2, %s254_s20  ;;  %s633_s15 = scalar_lea.vmem %s917_s11, 256 }
  0x61   : > { %485 = vmatpush3.bf16.msra.mxu0 %v574_v2  ;;  %v471_v6 = vld [vmem:[%s255_s29] ss:$0 sm:$0xff]  ;;  %p634_p11 = scmp.ne.s32.totalorder %s917_s11, %s633_s15  ;;  %p992_p4 = scmp.ne.s32.totalorder %s983_s23, 0 }
  0x62   : > { %s730_s26 = smov [#allocation7]  }
  0x63   : > { %p635_p13 = pnand %p634_p11, %p992_p4  ;;  %s637_s7 = sshll.u32 %s730_s26, 4  ;;  %s638_s7 = int_to_ptr.vmem [resolvable:$false] %s637_s7 }
  0x64   : > { %487 = vmatmul.mubr.msk.bf16.vlgmr.msra.gmra.mrb[0].mxu0 %vm284_vm1, %v260_v5  ;;  %s639_s6 = scalar_lea.vmem %s638_s7, 512  ;;  %p640_p5 = scmp.lt.s32.totalorder %s917_s11, %s638_s7 }
  0x65   : > { %p636_p0 = pneg %p635_p13  ;;  %p641_p3 = scmp.lt.s32.totalorder %s639_s6, %s633_s15 }
  0x67   : > { %p642_p6 = por %p641_p3, %p640_p5 }
  0x69   : > { %p643_p12 = pnand %p642_p6, %p636_p0 }
 0x137   : > { %v322_v7 = vpop.f32.mrb[0].mxu0 }
 0x138   : > { %v323_v8 = vadd.f32 %v471_v6, %v322_v7  ;;  %v488_v9 = vpop.f32.mrb[1].mxu0 }
 0x139   : > { %v325_v10 = vpop.f32.mrb[2].mxu0 }
 0x13a   : > { %329 = vst [vmem:[%s250_s28] sm:$0xff] %v323_v8  ;;  %v326_v11 = vadd.f32 %v471_v6, %v325_v10  ;;  %v489_v12 = vpop.f32.mrb[3].mxu0 }
 0x13c   : > { %330 = vst [vmem:[%s250_s28 + $0x8] sm:$0xff] %v326_v11 }
 0x13d   : > { %646 = shalt.err (!%p643_p12)
}
 0x13e   : > { %s647_s9 = scalar_lea.hbm %s922_s27, 256  ;;  %s651_s22 = scalar_lea.hbm %s973_s3, 768 }
 0x13f   : > { %p648_p2 = scmp.ne.s32.totalorder %s922_s27, %s647_s9  ;;  %p652_p1 = scmp.lt.u32.totalorder %s922_s27, %s973_s3 }
 0x140   : > { %p653_p9 = scmp.lt.u32.totalorder %s651_s22, %s647_s9  ;;  %p655_p11 = scmp.lt.u32.totalorder %s647_s9, %s922_s27 }
 0x141   : > { %p649_p7 = pnand %p648_p2, %p992_p4 }
 0x142   : > { %p654_p8 = por %p653_p9, %p652_p1 }
 0x143   : > { %p650_p10 = pneg %p649_p7 }
 0x144   : > { %p656_p13 = por %p655_p11, %p654_p8 }
 0x146   : > { %p657_p0 = pnand %p656_p13, %p650_p10 }
 0x148   : > { %660 = shalt.err (!%p657_p0)
}
 0x149   : > { %s731_s28 = smov 128   ;;  %s732_s19 = smov 384  }
 0x14a   : > { %s733_s5 = smov 8  }
 0x14b   : > { %496 = dma.vmem_to_hbm [thread:$0]  (%p992_p4), %s917_s11, 256, %s922_s27, %s332_s21, %s731_s28, %s732_s19, %s733_s5  }
 0x14c PF: > { %p513_p5 = scmp.ge.s32.totalorder %s719_s17, 2  ;;  %s362_s10 = sand.u32 1, %s699_s12  }
 0x14d   : > { %p993_p3 = scmp.ne.s32.totalorder %s984_s24, 0  ;;  %s363_s15 = scalar_lea.sflag [#allocation4], %s362_s10 }
 0x14f   : > { %p507_p6 = pnand %p513_p5, %p993_p3 }
 0x151   : > { %694 = dma.done.wait (!%p507_p6), %s363_s15, 256  }
 0x152   : > { %696 = vsyncadd (!%p507_p6), %s363_s15, 4294967040  ;;  %s20_s17 = sadd.s32 1, %s719_s17   ;;  %s994_s12 = smov %s703_s13 }
 0x153   : > { %p17_p12 = scmp.ge.s32.totalorder %s20_s17, 5   ;;  %s995_s13 = smov %s707_s14 }
 0x154   : > { %s996_s14 = smov %s864_s18  ;;  %s997_s15 = smov %s715_s16 }
 0x155   : > { %s998_s16 = smov %s1000_s30  ;;  %19 = sbr.rel (!%p17_p12) target bundleno = 7 (0x7), region = 86 }
 0x15c   :  { %368 = vsyncpa [#allocation3], 1 }
 0x15d   :  { %370 = vsyncpa [#allocation3 + $0x1], 1 }
 0x15e   :  { %371 = vsyncpa [#allocation6], 1 }
 0x15f   :  { %373 = vsyncpa [#allocation6 + $0x1], 1 }
 0x160   :  { %374 = vsyncpa [#allocation4], 1 }
 0x161   :  { %376 = vsyncpa [#allocation4 + $0x1], 1 }

</bundles_post_ra>
